<compile_context>
chip_gen: v7x
topology: tpu7x:2x2x1
jax: 0.10.0
libtpu: 0.0.40
codegen_flags: <defaults>
</compile_context>

<pallas_src>
import functools

import jax
import jax.numpy as jnp
from jax.experimental import pallas as pl
from jax.experimental.pallas import tpu as pltpu

_EPS = 1e-5
_VMEM_LIMIT = 32 * 1024 * 1024       # safe on v5e/v6e and within v7x's 64 MiB


# --------------------------------------------------------------------------- #
# Kernels
# --------------------------------------------------------------------------- #
def _fused_head_kernel(x_ref, gamma_ref, w1_ref, b1_ref, w2_ref, b2_ref, out_ref):
    """Single-pass path: BN with in-kernel (training-mode) batch stats + MLP."""
    x = x_ref[...].astype(jnp.float32)                           # (B, F2)
    mean = jnp.mean(x, axis=0, keepdims=True)
    centered = x - mean
    var = jnp.mean(centered * centered, axis=0, keepdims=True)   # biased variance
    scale = gamma_ref[...] * jax.lax.rsqrt(var + _EPS)
    y = centered * scale                          # beta folded into b1 (wrapper)
    h = jnp.dot(y.astype(w1_ref.dtype), w1_ref[...],
                preferred_element_type=jnp.float32) + b1_ref[...]
    h = jnp.maximum(h, 0.0)
    out = jnp.dot(h.astype(w2_ref.dtype), w2_ref[...],
                  preferred_element_type=jnp.float32) + b2_ref[...]
    out_ref[...] = out[:, :out_ref.shape[1]].astype(out_ref.dtype)   # narrow store


def _bn_stats_kernel(x_ref, pivot_ref, sum_ref, ssq_ref, *, batch, tiles_per_split):
    """Tiled pass 1: per-split (8, F2) partial sums of (x-pivot) and (x-pivot)^2."""
    c = pl.program_id(0)                  # TensorCore split ("parallel")
    i = pl.program_id(1)                  # batch tiles within the split ("arbitrary")

    @pl.when(i == 0)
    def _():
        sum_ref[...] = jnp.zeros_like(sum_ref)
        ssq_ref[...] = jnp.zeros_like(ssq_ref)

    tb = x_ref.shape[0]
    tile_idx = c * tiles_per_split + i    # logical batch-tile index
    rows = jax.lax.broadcasted_iota(jnp.int32, (tb, 1), 0)
    valid = (tile_idx * tb + rows) < batch          # mask ragged / clamped tiles

    x = x_ref[...].astype(jnp.float32) - pivot_ref[...]
    x = jnp.where(valid, x, 0.0)
    xg = x.reshape(tb // 8, 8, x.shape[-1])         # sublane-aligned split (free)
    sum_ref[...] += jnp.sum(xg, axis=0, keepdims=True)
    ssq_ref[...] += jnp.sum(xg * xg, axis=0, keepdims=True)


def _mlp_kernel(x_ref, w1_ref, b1_ref, w2_ref, b2_ref, out_ref):
    """Tiled pass 2: BN pre-folded into (w1, b1); pure GEMM -> ReLU -> GEMM."""
    h = jnp.dot(x_ref[...].astype(w1_ref.dtype), w1_ref[...],
                preferred_element_type=jnp.float32) + b1_ref[...]
    h = jnp.maximum(h, 0.0)
    out = jnp.dot(h.astype(w2_ref.dtype), w2_ref[...],
                  preferred_element_type=jnp.float32) + b2_ref[...]
    out_ref[...] = out[:, :out_ref.shape[1]].astype(out_ref.dtype)   # narrow store


# --------------------------------------------------------------------------- #
# Wrapper
# --------------------------------------------------------------------------- #
def _round_up(n, m):
    return ((n + m - 1) // m) * m


def _pad_to(a, shape):
    pads = [(0, t - s) for s, t in zip(a.shape, shape)]
    if any(hi for _, hi in pads):
        a = jnp.pad(a, pads)
    return a


def focushead_forward(features, gamma, beta, w1, b1, w2, b2, *,
                      matmul_dtype=jnp.float32, batch_tile=512,
                      fused_vmem_budget=24 * 1024 * 1024):
    """Forward pass of Focushead (training-mode BN). w1/w2 are stored (in, out)."""
    B, F2 = features.shape
    H = w1.shape[1]
    L = w2.shape[1]
    Hp, Lp = _round_up(H, 128), _round_up(L, 128)

    f32 = jnp.float32
    gamma_r = jnp.reshape(gamma, (1, F2)).astype(f32)
    beta_r = jnp.reshape(beta, (1, F2)).astype(f32)
    w1_p = _pad_to(w1.astype(f32), (F2, Hp))         # pad only the tiny weights
    b1_p = _pad_to(jnp.reshape(b1, (1, H)).astype(f32), (1, Hp))
    w2_p = _pad_to(w2.astype(f32), (Hp, Lp))
    b2_p = _pad_to(jnp.reshape(b2, (1, L)).astype(f32), (1, Lp))
    out_dtype = features.dtype

    # ---------------- single fused pass whenever it fits VMEM ----------------
    est_fused_bytes = 4 * (B * (F2 + Hp + 2 * Lp)            # x / hidden / out
                           + F2 * Hp + Hp * Lp + 3 * F2 + Hp + Lp)
    if est_fused_bytes <= fused_vmem_budget:
        b1_eff = beta_r @ w1_p + b1_p            # fold BN beta into Linear-1 bias
        w1_mm = w1_p.astype(matmul_dtype)
        w2_mm = w2_p.astype(matmul_dtype)
        full = lambda shape: pl.BlockSpec(shape, lambda: (0,) * len(shape))
        return pl.pallas_call(
            _fused_head_kernel,
            out_shape=jax.ShapeDtypeStruct((B, L), out_dtype),
            grid=(),
            in_specs=[
                full((B, F2)),      # features (unpadded, straight from HBM)
                full((1, F2)),      # gamma
                full((F2, Hp)),     # W1
                full((1, Hp)),      # b1 (+ folded beta)
                full((Hp, Lp)),     # W2
                full((1, Lp)),      # b2
            ],
            out_specs=full((B, L)),
            compiler_params=pltpu.CompilerParams(vmem_limit_bytes=_VMEM_LIMIT),
        )(features, gamma_r, w1_mm, b1_eff, w2_mm, b2_p)

    # ------------- two-pass tiled path (global BN statistics kept) -------------
    tb = max(8, (min(batch_tile, _round_up(B, 8)) // 8) * 8)
    nb = -(-B // tb)                                  # number of batch tiles
    num_splits = 2 if nb >= 2 else 1                  # v7x: one split per TensorCore
    tiles_per_split = -(-nb // num_splits)

    # Pass 1: per-feature sums of (x - pivot) over the FULL batch.  The pivot
    # (row 0) keeps E[x^2] - mean^2 well-conditioned for non-centered inputs.
    pivot = jax.lax.slice(features, (0, 0), (1, F2)).astype(f32)

    def x_stats_map(c, i):
        # Clamp logical tiles past the end; their rows are masked in-kernel.
        return (jnp.minimum(c * tiles_per_split + i, nb - 1), 0)

    part_spec = pl.BlockSpec((1, 8, F2), lambda c, i: (c, 0, 0))
    part_sum, part_ssq = pl.pallas_call(
        functools.partial(_bn_stats_kernel, batch=B,
                          tiles_per_split=tiles_per_split),
        out_shape=(jax.ShapeDtypeStruct((num_splits, 8, F2), f32),
                   jax.ShapeDtypeStruct((num_splits, 8, F2), f32)),
        grid=(num_splits, tiles_per_split),
        in_specs=[pl.BlockSpec((tb, F2), x_stats_map),
                  pl.BlockSpec((1, F2), lambda c, i: (0, 0))],
        out_specs=(part_spec, part_spec),
        compiler_params=pltpu.CompilerParams(
            dimension_semantics=("parallel", "arbitrary"),
            vmem_limit_bytes=_VMEM_LIMIT),
    )(features, pivot)

    s1 = jnp.sum(part_sum, axis=(0, 1)).reshape(1, F2)      # sum(x - pivot)
    s2 = jnp.sum(part_ssq, axis=(0, 1)).reshape(1, F2)      # sum((x - pivot)^2)
    mean_c = s1 / B
    var = s2 / B - mean_c * mean_c                          # biased variance
    mean = mean_c + pivot
    scale = gamma_r * jax.lax.rsqrt(var + _EPS)             # (1, F2)
    shift = beta_r - mean * scale                           # (1, F2)

    # Fold BN into Linear-1 (one-time, tiny); pass 2 is GEMM -> ReLU -> GEMM.
    # Fold kept in f32; with matmul_dtype=bf16 this stays within bf16 tolerance.
    w1_eff = (jnp.reshape(scale, (F2, 1)) * w1_p).astype(matmul_dtype)
    b1_eff = shift @ w1_p + b1_p
    w2_mm = w2_p.astype(matmul_dtype)

    const = lambda shape: pl.BlockSpec(shape, lambda i: (0,) * len(shape))
    return pl.pallas_call(
        _mlp_kernel,
        out_shape=jax.ShapeDtypeStruct((B, L), out_dtype),
        grid=(nb,),
        in_specs=[
            pl.BlockSpec((tb, F2), lambda i: (i, 0)),   # features tile (unpadded)
            const((F2, Hp)),                            # scale-folded W1 (resident)
            const((1, Hp)),                             # b1 (+ folded shift)
            const((Hp, Lp)),                            # W2 (resident)
            const((1, Lp)),                             # b2
        ],
        out_specs=pl.BlockSpec((tb, L), lambda i: (i, 0)),   # narrow (B, L) store
        compiler_params=pltpu.CompilerParams(
            dimension_semantics=("parallel",),          # both TCs on v7x
            vmem_limit_bytes=_VMEM_LIMIT),
    )(features, w1_eff, b1_eff, w2_mm, b2_p)


# --------------------------------------------------------------------------- #
# Parameters / test
# --------------------------------------------------------------------------- #
def init_params(key, hidden_dim, num_labels):
    """Synthetic params with Focushead.__init__ shapes.

    BN affine is randomized (instead of the PyTorch default 1/0) so the affine
    path is actually exercised; Linear weights are stored transposed (in, out).
    """
    F2, H, L = 2 * hidden_dim, hidden_dim, num_labels
    k1, k2, k3, k4, k5, k6 = jax.random.split(key, 6)
    gamma = 1.0 + 0.1 * jax.random.normal(k5, (F2,), jnp.float32)
    beta = 0.1 * jax.random.normal(k6, (F2,), jnp.float32)
    w1 = jax.random.normal(k1, (F2, H), jnp.float32) * (1.0 / jnp.sqrt(F2))
    b1 = jax.random.normal(k2, (H,), jnp.float32) * 0.01
    w2 = jax.random.normal(k3, (H, L), jnp.float32) * (1.0 / jnp.sqrt(H))
    b2 = jax.random.normal(k4, (L,), jnp.float32) * 0.01
    return gamma, beta, w1, b1, w2, b2


if __name__ == "__main__":
    hidden_dim = 32
    num_labels = 8

    key = jax.random.PRNGKey(0)
    k_x, k_p, k_x2, k_x3 = jax.random.split(key, 4)
    gamma, beta, w1, b1, w2, b2 = init_params(k_p, hidden_dim, num_labels)

    def reference(x):
        mean = jnp.mean(x, axis=0, keepdims=True)
        var = jnp.mean((x - mean) ** 2, axis=0, keepdims=True)
        y = (x - mean) * jax.lax.rsqrt(var + _EPS) * gamma + beta
        return jnp.maximum(y @ w1 + b1, 0.0) @ w2 + b2

    # Small batch -> fused single-pass path (in-kernel batch statistics).
    x_small = jax.random.normal(k_x, (8, 2 * hidden_dim), jnp.float32)
    out_small = jax.block_until_ready(
        focushead_forward(x_small, gamma, beta, w1, b1, w2, b2))
    assert out_small.shape == (8, num_labels)
    assert jnp.allclose(out_small, reference(x_small), atol=1e-3, rtol=1e-3)

    # Forced two-pass tiled path: non-centered data, ragged last tile.
    x_big = 5.0 + 3.0 * jax.random.normal(k_x2, (1000, 2 * hidden_dim), jnp.float32)
    out_big = jax.block_until_ready(
        focushead_forward(x_big, gamma, beta, w1, b1, w2, b2,
                          batch_tile=128, fused_vmem_budget=0))
    assert out_big.shape == (1000, num_labels)
    assert jnp.allclose(out_big, reference(x_big), atol=1e-3, rtol=1e-3)

    # Odd number of tiles -> exercises the clamped+masked tile in the TC split.
    x_odd = jax.random.normal(k_x3, (600, 2 * hidden_dim), jnp.float32)
    out_odd = jax.block_until_ready(
        focushead_forward(x_odd, gamma, beta, w1, b1, w2, b2,
                          batch_tile=128, fused_vmem_budget=0))
    assert out_odd.shape == (600, num_labels)
    assert jnp.allclose(out_odd, reference(x_odd), atol=1e-3, rtol=1e-3)

    print("KERNEL_OK")
</pallas_src>

<mosaic_0001>
module attributes {stable_mosaic.version = 11 : i64} {
  func.func @_fused_head_kernel(%arg0: memref<8x64xf32, #tpu.memory_space<vmem>>, %arg1: memref<1x64xf32, #tpu.memory_space<vmem>>, %arg2: memref<64x128xf32, #tpu.memory_space<vmem>>, %arg3: memref<1x128xf32, #tpu.memory_space<vmem>>, %arg4: memref<128x128xf32, #tpu.memory_space<vmem>>, %arg5: memref<1x128xf32, #tpu.memory_space<vmem>>, %arg6: memref<8x8xf32, #tpu.memory_space<vmem>>) attributes {dimension_semantics = [], scalar_prefetch = 0 : i64, scratch_operands = 0 : i64, tpu.core_type = #tpu.core_type<tc>} {
    %c0 = arith.constant 0 : index
    %c0_0 = arith.constant 0 : index
    %0 = vector.load %arg0[%c0, %c0_0] : memref<8x64xf32, #tpu.memory_space<vmem>>, vector<8x64xf32>
    %cst = arith.constant dense<0.000000e+00> : vector<64xf32>
    %1 = vector.multi_reduction <add>, %0, %cst [0] : vector<8x64xf32> to vector<64xf32>
    %2 = vector.shape_cast %1 : vector<64xf32> to vector<1x64xf32>
    %cst_1 = arith.constant 8.000000e+00 : f32
    %3 = vector.broadcast %cst_1 : f32 to vector<1x64xf32>
    %4 = arith.divf %2, %3 : vector<1x64xf32>
    %5 = vector.broadcast %4 : vector<1x64xf32> to vector<8x64xf32>
    %6 = arith.subf %0, %5 : vector<8x64xf32>
    %7 = arith.mulf %6, %6 : vector<8x64xf32>
    %cst_2 = arith.constant dense<0.000000e+00> : vector<64xf32>
    %8 = vector.multi_reduction <add>, %7, %cst_2 [0] : vector<8x64xf32> to vector<64xf32>
    %9 = vector.shape_cast %8 : vector<64xf32> to vector<1x64xf32>
    %cst_3 = arith.constant 8.000000e+00 : f32
    %10 = vector.broadcast %cst_3 : f32 to vector<1x64xf32>
    %11 = arith.divf %9, %10 : vector<1x64xf32>
    %c0_4 = arith.constant 0 : index
    %c0_5 = arith.constant 0 : index
    %12 = vector.load %arg1[%c0_4, %c0_5] : memref<1x64xf32, #tpu.memory_space<vmem>>, vector<1x64xf32>
    %cst_6 = arith.constant 9.99999974E-6 : f32
    %13 = vector.broadcast %cst_6 : f32 to vector<1x64xf32>
    %14 = arith.addf %11, %13 : vector<1x64xf32>
    %15 = math.rsqrt %14 : vector<1x64xf32>
    %16 = arith.mulf %12, %15 : vector<1x64xf32>
    %17 = vector.broadcast %16 : vector<1x64xf32> to vector<8x64xf32>
    %18 = arith.mulf %6, %17 : vector<8x64xf32>
    %c0_7 = arith.constant 0 : index
    %c0_8 = arith.constant 0 : index
    %19 = vector.load %arg2[%c0_7, %c0_8] : memref<64x128xf32, #tpu.memory_space<vmem>>, vector<64x128xf32>
    %cst_9 = arith.constant dense<0.000000e+00> : vector<8x128xf32>
    %20 = tpu.matmul %18, %19, %cst_9 {dimension_numbers = #tpu.dot_dimension_numbers<[1], [0], [0], [1], [0, 0, 1, 1], [], []>} : vector<8x64xf32>, vector<64x128xf32>, vector<8x128xf32> -> vector<8x128xf32>
    %c0_10 = arith.constant 0 : index
    %c0_11 = arith.constant 0 : index
    %21 = vector.load %arg3[%c0_10, %c0_11] : memref<1x128xf32, #tpu.memory_space<vmem>>, vector<1x128xf32>
    %22 = vector.broadcast %21 : vector<1x128xf32> to vector<8x128xf32>
    %23 = arith.addf %20, %22 : vector<8x128xf32>
    %cst_12 = arith.constant 0.000000e+00 : f32
    %24 = vector.broadcast %cst_12 : f32 to vector<8x128xf32>
    %25 = arith.maximumf %23, %24 : vector<8x128xf32>
    %c0_13 = arith.constant 0 : index
    %c0_14 = arith.constant 0 : index
    %26 = vector.load %arg4[%c0_13, %c0_14] : memref<128x128xf32, #tpu.memory_space<vmem>>, vector<128x128xf32>
    %cst_15 = arith.constant dense<0.000000e+00> : vector<8x128xf32>
    %27 = tpu.matmul %25, %26, %cst_15 {dimension_numbers = #tpu.dot_dimension_numbers<[1], [0], [0], [1], [0, 0, 1, 1], [], []>} : vector<8x128xf32>, vector<128x128xf32>, vector<8x128xf32> -> vector<8x128xf32>
    %c0_16 = arith.constant 0 : index
    %c0_17 = arith.constant 0 : index
    %28 = vector.load %arg5[%c0_16, %c0_17] : memref<1x128xf32, #tpu.memory_space<vmem>>, vector<1x128xf32>
    %29 = vector.broadcast %28 : vector<1x128xf32> to vector<8x128xf32>
    %30 = arith.addf %27, %29 : vector<8x128xf32>
    %31 = vector.extract_strided_slice %30 {offsets = [0, 0], sizes = [8, 8], strides = [1, 1]} : vector<8x128xf32> to vector<8x8xf32>
    %c0_18 = arith.constant 0 : index
    %c0_19 = arith.constant 0 : index
    %32 = vector.load %arg6[%c0_18, %c0_19] : memref<8x8xf32, #tpu.memory_space<vmem>>, vector<8x8xf32>
    tpu.vector_store %arg6[%c0_18, %c0_19], %31 {strides = array<i32>} : memref<8x8xf32, #tpu.memory_space<vmem>>, vector<8x8xf32>,
    return
  }
}

</mosaic_0001>

<bundles_post_ra>
// kernel: tpu_custom_call.1
= control target key start
LH: loop header
LB: loop body
LE: loop exit
PB: predicated region body
PF: predicated region fallthrough
CT: control target
= control target key end

     0   :  { %11 = vsyncpa [#allocation3], 0  ;;  %s641_s0 = inlined_call_operand.hbm [shape: f32[8,64], index: 0, kind: input, shape index: {}]   ;;  %s642_s1 = inlined_call_operand.vmem [shape: f32[1,64], index: 1, kind: input, shape index: {}]   ;;  %s643_s2 = inlined_call_operand.hbm [shape: f32[64,128], index: 2, kind: input, shape index: {}]   ;;  %s644_s3 = inlined_call_operand.vmem [shape: f32[1,128], index: 3, kind: input, shape index: {}]   ;;  %s645_s4 = inlined_call_operand.hbm [shape: f32[128,128], index: 4, kind: input, shape index: {}]   ;;  %s646_s5 = inlined_call_operand.vmem [shape: f32[1,128], index: 5, kind: input, shape index: {}]   ;;  %s647_s6 = inlined_call_operand.hbm [shape: f32[8,8], index: 6, kind: output, shape index: {}]  }
   0x1   :  { %12 = vsyncpa [#allocation6], 0 }
   0x2   :  { %13 = vsyncpa [#allocation4], 0  ;;  %s519_s21 = smov [#allocation5]   ;;  %s425_s25 = scalar_lea.hbm %s643_s2, 1024 }
   0x3   :  { %s31_s22 = sshll.u32 %s519_s21, 4  ;;  %p426_p0 = scmp.ne.s32.totalorder %s643_s2, %s425_s25  ;;  %s32_s22 = int_to_ptr.vmem [resolvable:$true] %s31_s22 }
   0x4   :  { %p429_p1 = scmp.lt.u32.totalorder %s425_s25, %s643_s2 }
   0x6   :  { %p431_p2 = pnand %p429_p1, %p426_p0 }
   0x8   :  { %434 = shalt.err (!%p431_p2)
}
   0x9   :  { %s435_s30 = scalar_lea.vmem %s32_s22, 1024  ;;  %p440_p4 = scmp.lt.s32.totalorder %s32_s22, %s32_s22 }
   0xa   :  { %p436_p3 = scmp.ne.s32.totalorder %s32_s22, %s435_s30  ;;  %p441_p5 = scmp.lt.s32.totalorder %s435_s30, %s435_s30 }
   0xc   :  { %p442_p6 = por %p441_p5, %p440_p4 }
   0xe   :  { %p443_p7 = pnand %p442_p6, %p436_p3 }
  0x10   :  { %446 = shalt.err (!%p443_p7)
}
  0x11   :  { %s520_s7 = smov 128   ;;  %s521_s8 = smov 8  }
  0x12   :  { %37 = dma.hbm_to_vmem [thread:$0]  %s643_s2, 1024, %s32_s22, [#allocation6], %s520_s7, %s520_s7, %s521_s8  }
  0x13   :  { %s522_s11 = smov [#allocation2]   ;;  %s523_s13 = smov [#allocation7]  }
  0x14   :  { %s20_s12 = sshll.u32 %s522_s11, 4  ;;  %s45_s14 = sshll.u32 %s523_s13, 4  ;;  %s21_s12 = int_to_ptr.vmem [resolvable:$true] %s20_s12  ;;  %s46_s14 = int_to_ptr.vmem [resolvable:$true] %s45_s14 }
  0x15   :  { %s447_s17 = scalar_lea.hbm %s641_s0, 128 }
  0x16   :  { %p448_p8 = scmp.ne.s32.totalorder %s641_s0, %s447_s17  ;;  %p451_p9 = scmp.lt.u32.totalorder %s447_s17, %s641_s0 }
  0x18   :  { %p453_p10 = pnand %p451_p9, %p448_p8 }
  0x1a   :  { %456 = shalt.err (!%p453_p10)
}
  0x1b   :  { %s457_s2 = scalar_lea.vmem %s21_s12, 128  ;;  %p462_p12 = scmp.lt.s32.totalorder %s21_s12, %s21_s12 }
  0x1c   :  { %p458_p11 = scmp.ne.s32.totalorder %s21_s12, %s457_s2  ;;  %p463_p13 = scmp.lt.s32.totalorder %s457_s2, %s457_s2 }
  0x1e   :  { %p464_p0 = por %p463_p13, %p462_p12 }
  0x20   :  { %p465_p1 = pnand %p464_p0, %p458_p11 }
  0x22   :  { %468 = shalt.err (!%p465_p1)
}
  0x23   :  { %23 = dma.hbm_to_vmem [thread:$0]  %s641_s0, 128, %s21_s12, [#allocation3]  }
  0x24   :  { %s469_s26 = scalar_lea.hbm %s645_s4, 2048 }
  0x25   :  { %p470_p2 = scmp.ne.s32.totalorder %s645_s4, %s469_s26  ;;  %p473_p3 = scmp.lt.u32.totalorder %s469_s26, %s645_s4 }
  0x27   :  { %p475_p4 = pnand %p473_p3, %p470_p2 }
  0x29   :  { %478 = shalt.err (!%p475_p4)
}
  0x2a   :  { %s479_s9 = scalar_lea.vmem %s46_s14, 2048  ;;  %p484_p6 = scmp.lt.s32.totalorder %s46_s14, %s46_s14 }
  0x2b   :  { %p480_p5 = scmp.ne.s32.totalorder %s46_s14, %s479_s9  ;;  %p485_p7 = scmp.lt.s32.totalorder %s479_s9, %s479_s9 }
  0x2d   :  { %p486_p8 = por %p485_p7, %p484_p6 }
  0x2f   :  { %p487_p9 = pnand %p486_p8, %p480_p5 }
  0x31   :  { %490 = shalt.err (!%p487_p9)
}
  0x32   :  { %51 = dma.hbm_to_vmem [thread:$0]  %s645_s4, 2048, %s46_s14, [#allocation6], %s520_s7, %s520_s7, %s521_s8  }
  0x33   :  { %513 = dma.done.wait [#allocation3], 128  }
  0x34   :  { %514 = vsyncadd [#allocation3], 4294967168 }
  0x35   :  { %515 = dma.done.wait [#allocation6], 3072  }
  0x36   :  { %516 = vsyncadd [#allocation6], 4294964224  ;;  %v524_v0 = vmov 0.0|0.0   ;;  %vm525_vm0 = vmmov 0   ;;  %v526_v1 = vmov 0.0   ;;  %v95_v2 = vld [vmem:[#allocation5] sm:$0xff]  ;;  %v89_v55 = vlaneseq }
  0x37   :  { %378 = vmatprep.subr.bf16.mxu0 %v524_v0  ;;  %340 = vmatprep.mubr.msk.f32.mxu0 %vm525_vm0, %v526_v1  ;;  %v96_v3 = vld [vmem:[#allocation5 + $0x8] sm:$0xff]  ;;  %v97_v4 = vld [vmem:[#allocation5 + $0x10] sm:$0xff]  ;;  %vm64_vm1 = vcmask 523264   ;;  %v98_v6 = vld [vmem:[#allocation5 + $0x18] sm:$0xff]  ;;  %s527_s13 = smov [#allocation8]   ;;  %vm277_vm2 = vcmask 64512  }
  0x38   :  { %390 = vmatprep.subr.bf16.mxu1 %v524_v0  ;;  %375 = vmatprep.mubr.msk.f32.mxu1 %vm525_vm0, %v526_v1  ;;  %v379_v5 = vpack.c.bf16 %v96_v3, %v95_v2  ;;  %v63_v7 = vld [vmem:[#allocation2] sm:$0xff]  ;;  %v382_v8 = vpack.c.bf16 %v98_v6, %v97_v4  ;;  %v99_v9 = vld [vmem:[#allocation5 + $0x20] sm:$0xff]  ;;  %v185_v12 = vld [vmem:[#allocation7 + $0x8] sm:$0xff]  ;;  %v90_v56 = vshrl.u32 %v89_v55, 7  ;;  %s285_s14 = sshll.u32 %s527_s13, 4  ;;  %s286_s14 = int_to_ptr.vmem [resolvable:$true] %s285_s14 }
  0x39   :  { %v65_v10 = vsel %vm64_vm1, %v63_v7, 0.0  ;;  %v184_v11 = vld [vmem:[#allocation7] sm:$0xff]  ;;  %v100_v13 = vld [vmem:[#allocation5 + $0x28] sm:$0xff]  ;;  %v186_v16 = vld [vmem:[#allocation7 + $0x10] sm:$0xff]  ;;  %s491_s15 = scalar_lea.vmem %s286_s14, 128  ;;  %p496_p11 = scmp.lt.s32.totalorder %s286_s14, %s286_s14 }
  0x3a   :  { %380 = vmatpush3.bf16.msra.mxu0 %v379_v5  ;;  %v66_v14 = vrot.slane %v65_v10, 4  ;;  %v391_v15 = vpack.c.bf16 %v185_v12, %v184_v11  ;;  %v187_v17 = vld [vmem:[#allocation7 + $0x18] sm:$0xff]  ;;  %v385_v20 = vpack.c.bf16 %v100_v13, %v99_v9  ;;  %v188_v21 = vld [vmem:[#allocation7 + $0x20] sm:$0xff]  ;;  %v189_v22 = vld [vmem:[#allocation7 + $0x28] sm:$0xff]  ;;  %v91_v58 = vsub.s32 0, %v90_v56  ;;  %p492_p10 = scmp.ne.s32.totalorder %s286_s14, %s491_s15  ;;  %p497_p12 = scmp.lt.s32.totalorder %s491_s15, %s491_s15 }
  0x3b   :  { %381 = vmatprep.subr.bf16.mxu0 %v524_v0  ;;  %v394_v19 = vpack.c.bf16 %v187_v17, %v186_v16  ;;  %v101_v23 = vld [vmem:[#allocation5 + $0x30] sm:$0xff]  ;;  %v102_v24 = vld [vmem:[#allocation5 + $0x38] sm:$0xff]  ;;  %v397_v27 = vpack.c.bf16 %v189_v22, %v188_v21  ;;  %v192_v34 = vld [vmem:[#allocation7 + $0x40] sm:$0xff] }
  0x3c   :  { %v67_v18 = vadd.f32 %v66_v14, %v65_v10  ;;  %392 = vmatpush3.bf16.msra.mxu1 %v391_v15  ;;  %v388_v28 = vpack.c.bf16 %v102_v24, %v101_v23  ;;  %v190_v29 = vld [vmem:[#allocation7 + $0x30] sm:$0xff]  ;;  %v191_v30 = vld [vmem:[#allocation7 + $0x38] sm:$0xff]  ;;  %v193_v35 = vld [vmem:[#allocation7 + $0x48] sm:$0xff]  ;;  %p498_p13 = por %p497_p12, %p496_p11 }
  0x3d   :  { %393 = vmatprep.subr.bf16.mxu1 %v524_v0  ;;  %v400_v33 = vpack.c.bf16 %v191_v30, %v190_v29  ;;  %v403_v38 = vpack.c.bf16 %v193_v35, %v192_v34  ;;  %v194_v39 = vld [vmem:[#allocation7 + $0x50] sm:$0xff]  ;;  %v195_v40 = vld [vmem:[#allocation7 + $0x58] sm:$0xff]  ;;  %v196_v45 = vld [vmem:[#allocation7 + $0x60] sm:$0xff] }
  0x3e   :  { %383 = vmatpush3.bf16.msra.mxu0 %v382_v8  ;;  %v68_v25 = vrot.slane %v67_v18, 2  ;;  %v406_v43 = vpack.c.bf16 %v195_v40, %v194_v39  ;;  %v197_v46 = vld [vmem:[#allocation7 + $0x68] sm:$0xff]  ;;  %v84_v57 = vld [vmem:[%s642_s1] sm:$0x1]  ;;  %v198_v63 = vld [vmem:[#allocation7 + $0x70] sm:$0xff]  ;;  %p499_p0 = pnand %p498_p13, %p492_p10 }
  0x3f   :  { %384 = vmatprep.subr.bf16.mxu0 %v524_v0  ;;  %v409_v48 = vpack.c.bf16 %v197_v46, %v196_v45  ;;  %v199_v1 = vld [vmem:[#allocation7 + $0x78] sm:$0xff] }
  0x40   :  { %v69_v26 = vadd.f32 %v68_v25, %v67_v18  ;;  %395 = vmatpush3.bf16.msra.mxu1 %v394_v19  ;;  %v295_v2 = vld [vmem:[%s644_s3] ss:$0 sm:$0xff] }
  0x41   :  { %396 = vmatprep.subr.bf16.mxu1 %v524_v0 }
  0x42   :  { %386 = vmatpush3.bf16.msra.mxu0 %v385_v20  ;;  %v70_v31 = vrot.slane %v69_v26, 1 }
  0x43   :  { %387 = vmatprep.subr.bf16.mxu0 %v524_v0 }
  0x44   :  { %v71_v32 = vadd.f32 %v70_v31, %v69_v26  ;;  %398 = vmatpush3.bf16.msra.mxu1 %v397_v27 }
  0x45   :  { %399 = vmatprep.subr.bf16.mxu1 %v524_v0 }
  0x46   :  { %389 = vmatpush3.bf16.msra.mxu0 %v388_v28  ;;  %v73_v36 = vmul.f32 0.125, %v71_v32 }
  0x48   :  { %v74_v37 = vsub.f32 %v63_v7, %v73_v36  ;;  %401 = vmatpush3.bf16.msra.mxu1 %v400_v33  ;;  %v297_v7 = vld [vmem:[%s646_s5] ss:$0 sm:$0xff] }
  0x49   :  { %402 = vmatprep.subr.bf16.mxu1 %v524_v0 }
  0x4a   :  { %v75_v41 = vmul.f32 %v74_v37, %v74_v37 }
  0x4c   :  { %v76_v42 = vsel %vm64_vm1, %v75_v41, 0.0  ;;  %404 = vmatpush3.bf16.msra.mxu1 %v403_v38 }
  0x4d   :  { %v77_v44 = vrot.slane %v76_v42, 4  ;;  %405 = vmatprep.subr.bf16.mxu1 %v524_v0 }
  0x4f   :  { %v78_v47 = vadd.f32 %v77_v44, %v76_v42 }
  0x50   :  { %407 = vmatpush3.bf16.msra.mxu1 %v406_v43 }
  0x51   :  { %v79_v49 = vrot.slane %v78_v47, 2  ;;  %408 = vmatprep.subr.bf16.mxu1 %v524_v0 }
  0x53   :  { %v80_v50 = vadd.f32 %v79_v49, %v78_v47 }
  0x54   :  { %410 = vmatpush3.bf16.msra.mxu1 %v409_v48 }
  0x55   :  { %v81_v51 = vrot.slane %v80_v50, 1  ;;  %411 = vmatprep.subr.bf16.mxu1 %v524_v0  ;;  %v412_v0 = vpack.c.bf16 %v199_v1, %v198_v63 }
  0x57   :  { %v82_v52 = vadd.f32 %v81_v51, %v80_v50 }
  0x58   :  { %413 = vmatpush3.bf16.msra.mxu1 %v412_v0 }
  0x59   :  { %v83_v53 = vmul.f32 0.125, %v82_v52 }
  0x5b   :  { %v85_v54 = vadd.f32 1e-05, %v83_v53 }
  0x5d   :  { %423 = vrsqrt.f32 %v85_v54 }
  0x67   :  { %v424_v59 = vpop.eup %423 }
  0x68   :  { %v87_v60 = vmul.f32 %v424_v59, %v84_v57 }
  0x6a   :  { %v92_v61 = vrot.slane %v87_v60, %v91_v58 }
  0x6c   :  { %v94_v62 = vmul.f32 %v92_v61, %v74_v37 }
  0x6e   :  { %341 = vmatmul.mubr.msk.f32.vlgmr.msra.gmra.mrb[0].mxu0 %vm64_vm1, %v94_v62 }
 0x141   :  { %v179_v3 = vpop.f32.mrb[0].mxu0 }
 0x142   :  { %v180_v4 = vadd.f32 %v295_v2, %v179_v3  ;;  %v342_v5 = vpop.f32.mrb[1].mxu0 }
 0x144   :  { %v183_v6 = vmax.f32 %v180_v4, 0.0 }
 0x146   :  { %376 = vmatmul.mubr.f32.vlgmr.msra.gmra.mrb[0].mxu1 %v183_v6 }
 0x219   :  { %v273_v8 = vpop.f32.mrb[0].mxu1 }
 0x21a   :  { %v274_v9 = vadd.f32 %v297_v7, %v273_v8  ;;  %v377_v10 = vpop.f32.mrb[1].mxu1 }
 0x21c   :  { %278 = vst.msk [vmem:[#allocation8] sm:$0xff] %vm277_vm2, %v274_v9 }
 0x21d   :  { %502 = shalt.err (!%p499_p0)
}
 0x21e   :  { %s503_s17 = scalar_lea.hbm %s647_s6, 128 }
 0x21f   :  { %p504_p1 = scmp.ne.s32.totalorder %s647_s6, %s503_s17  ;;  %p507_p2 = scmp.lt.u32.totalorder %s503_s17, %s647_s6 }
 0x221   :  { %p509_p3 = pnand %p507_p2, %p504_p1 }
 0x223   :  { %512 = shalt.err (!%p509_p3)
}
 0x224   :  { %288 = dma.vmem_to_hbm [thread:$0]  %s286_s14, 128, %s647_s6, [#allocation4]  }
 0x225   :  { %517 = dma.done.wait [#allocation4], 128  }
 0x226   :  { %518 = vsyncadd [#allocation4], 4294967168 }
 0x227   :  { %292 = vsyncpa [#allocation3], 1 }
 0x228   :  { %293 = vsyncpa [#allocation6], 1 }
 0x229   :  { %294 = vsyncpa [#allocation4], 1 }

</bundles_post_ra>
